<compile_context>
chip_gen: v7x
topology: tpu7x:2x2x1
jax: 0.10.0
libtpu: 0.0.40
codegen_flags: <defaults>
</compile_context>

<pallas_src>
import math
import numpy as np
import jax
import jax.numpy as jnp
from jax import lax
from jax.experimental import pallas as pl
from jax.experimental.pallas import tpu as pltpu


def _round_up(x, m):
    return ((x + m - 1) // m) * m


# ----------------------------------------------------------------------------
# Host-side (numpy) bucket-id precompute — mirrors the @torch.no_grad() helpers
# (piecewise_index, get_bucket_ids_2d); these are cached constants in PyTorch.
# ----------------------------------------------------------------------------
def piecewise_index_np(rp, alpha, beta, gamma):
    rp = np.asarray(rp, dtype=np.float64)
    rp_abs = np.abs(rp)
    not_mask = rp_abs > alpha
    rp_abs_safe = np.where(not_mask, rp_abs, 1.0)  # avoid log(0)
    y = np.sign(rp) * np.clip(
        np.round(alpha + np.log(rp_abs_safe / alpha) / math.log(gamma / alpha)
                 * (beta - alpha)),
        a_min=None, a_max=beta)
    idx = np.round(rp).astype(np.int64)
    idx = np.where(not_mask, y.astype(np.int64), idx)
    return idx


def get_cross_bucket_ids(height, width, alpha, beta, gamma):
    """Full (L, L) bucket-id tables (used only for the reference check)."""
    rows = np.arange(height).reshape(height, 1).repeat(width, axis=1)
    cols = np.arange(width).reshape(1, width).repeat(height, axis=0)
    pos = np.stack([rows, cols], axis=2).reshape(-1, 2)           # (L, 2)
    diff = pos[:, None, :] - pos[None, :, :]                      # (L, L, 2)
    beta_int = int(beta)
    nb = 2 * beta_int + 1
    rp_rows = piecewise_index_np(diff[:, :, 0], alpha, beta, gamma) + beta_int
    rp_cols = piecewise_index_np(diff[:, :, 1], alpha, beta, gamma) + beta_int
    return rp_rows, rp_cols, nb


def build_cross_tables(height, width, alpha, beta, gamma):
    """Separable Cross tables, laid out with L on the lane (last) axis.

    Returns:
      sel_cat : (2*NB, Gp, Lpi) f32, where Gp = round_up(height+width, 8),
                Lpi = round_up(L, 8).
                sel_cat[k, g, i]     = (bucket_row(row(i) - g) == k)        for g <  GH, k <  NB
                sel_cat[k, GH+c, i]  = (bucket_col(col(i) - c) == k - NB)   for k >= NB
      e_cat   : (Gp, Lpj) f32, Lpj = max(128, round_up(L, 128)).
                e_cat[g, j]    = (row(j) == g)      for g < GH
                e_cat[GH+c, j] = (col(j) == c)
      nb, Lpi, Lpj
    """
    beta_int = int(beta)
    nb = 2 * beta_int + 1
    GH, GW = height, width
    L = height * width
    Lpi = _round_up(L, 8)
    Lpj = max(128, _round_up(L, 128))
    Gp = _round_up(GH + GW, 8)
    K2 = 2 * nb

    ri = np.arange(height)
    ci = np.arange(width)
    # 1D relative-bucket patterns: Rrow[a, b] = bucket(a - b)
    Rrow = piecewise_index_np(ri[:, None] - ri[None, :], alpha, beta, gamma) + beta_int
    Rcol = piecewise_index_np(ci[:, None] - ci[None, :], alpha, beta, gamma) + beta_int

    rows_of = np.repeat(np.arange(height), width)   # row(i), row-major tokens
    cols_of = np.tile(np.arange(width), height)     # col(i)
    i_idx = np.arange(L)

    sel_cat = np.zeros((K2, Gp, Lpi), np.float32)
    for g in range(GH):
        sel_cat[Rrow[rows_of, g], g, i_idx] = 1.0
    for g in range(GW):
        sel_cat[nb + Rcol[cols_of, g], GH + g, i_idx] = 1.0

    e_cat = np.zeros((Gp, Lpj), np.float32)
    e_cat[rows_of, i_idx] = 1.0
    e_cat[GH + cols_of, i_idx] = 1.0
    return sel_cat, e_cat, nb, Lpi, Lpj


# ----------------------------------------------------------------------------
# Pallas kernel. One grid step = (head h, Bblk batches). Per batch b (unrolled):
#   t    = W_cat[h] @ xT[b]                       (2NB, D) @ (D, Lpi)   MXU
#   s    = sum_k sel_cat[k] * t[k, :]             (Gp, Lpi)             VPU, L on lanes
#   out  = s^T-contracted with E_cat              -> (Lpi, Lpj)         MXU, j lane-dense
# All dots are plain 2-D dot_generals; no reshapes, no cross-lane broadcasts.
# ----------------------------------------------------------------------------
def rpe_cross_kernel(xT_ref, w_ref, sel_ref, e_ref, o_ref):
    bblk = xT_ref.shape[0]
    k2 = w_ref.shape[0]

    w = w_ref[...]                                   # (2NB, D)
    e = e_ref[...]                                   # (Gp, Lpj)

    for b in range(bblk):
        xb = xT_ref[b]                               # (D, Lpi)
        # t[k, i] = sum_d W_cat[k, d] * x[i, d]
        t = jnp.dot(w, xb, preferred_element_type=jnp.float32)   # (2NB, Lpi)  MXU

        # s[g, i] = t[ bucket(i relative to group g), i ]   (register-resident)
        s = sel_ref[0] * t[0:1, :]
        for k in range(1, k2):
            s = s + sel_ref[k] * t[k:k + 1, :]       # sublane-broadcast, VPU

        # out[i, j] = sum_g s[g, i] * E_cat[g, j]   (lane-dense along j)
        out_b = lax.dot_general(
            s, e,
            dimension_numbers=(((0,), (0,)), ((), ())),
            preferred_element_type=jnp.float32)      # (Lpi, Lpj)  MXU
        o_ref[b, :, :] = out_b.astype(o_ref.dtype)


def _pick_b_block(B, per_batch_bytes, fixed_bytes, budget_bytes, cap=16):
    best = 1
    for cand in range(1, min(B, cap) + 1):
        if B % cand == 0 and fixed_bytes + cand * per_batch_bytes <= budget_bytes:
            best = cand
    return best


def rpe2d_cross_forward(x, w_rows, w_cols, sel_cat, e_cat, *, b_block=None,
                        vmem_block_budget_bytes=40 * 1024 * 1024,
                        vmem_limit_bytes=48 * 1024 * 1024):
    """x: (B, H, L, D); w_rows/w_cols: (H, D, NB); tables from build_cross_tables."""
    B, H, L, D = x.shape
    K2, Gp, Lpi = sel_cat.shape
    Gp2, Lpj = e_cat.shape
    nb = K2 // 2
    assert Gp2 == Gp and Lpi >= L and Lpj >= L
    assert w_rows.shape == (H, D, nb) and w_cols.shape == (H, D, nb)

    # Host-side layout prep (done once by XLA, outside the kernel):
    #   x -> (B, H, D, Lpi) so L sits on lanes inside the kernel,
    #   W -> (H, 2NB, D) so the first matmul is a canonical (2NB,D)@(D,L).
    xT = jnp.swapaxes(x, 2, 3)
    if Lpi > L:
        xT = jnp.pad(xT, ((0, 0), (0, 0), (0, 0), (0, Lpi - L)))
    w_cat = jnp.concatenate([w_rows, w_cols], axis=-1)     # (H, D, 2NB)
    wT_cat = jnp.swapaxes(w_cat, 1, 2)                     # (H, 2NB, D)

    # VMEM-budgeted batch block (double-buffered x/out blocks + constant tables).
    per_batch_bytes = 2 * 4 * (Lpi * Lpj + D * Lpi)
    fixed_bytes = 2 * 4 * (K2 * D + K2 * Gp * Lpi + Gp * Lpj)
    if b_block is None:
        b_block = _pick_b_block(B, per_batch_bytes, fixed_bytes, vmem_block_budget_bytes)
    assert B % b_block == 0
    n_b_blocks = B // b_block

    grid_spec = pltpu.PrefetchScalarGridSpec(
        num_scalar_prefetch=0,
        grid=(H, n_b_blocks),                 # batch innermost -> per-head weight stays resident
        in_specs=[
            pl.BlockSpec((b_block, pl.Squeezed(), D, Lpi), lambda h, b: (b, h, 0, 0)),  # xT
            pl.BlockSpec((pl.Squeezed(), K2, D), lambda h, b: (h, 0, 0)),               # W_cat^T
            pl.BlockSpec((K2, Gp, Lpi), lambda h, b: (0, 0, 0)),                        # sel_cat (const)
            pl.BlockSpec((Gp, Lpj), lambda h, b: (0, 0)),                               # e_cat (const)
        ],
        out_specs=pl.BlockSpec((b_block, pl.Squeezed(), Lpi, Lpj), lambda h, b: (b, h, 0, 0)),
    )

    flops = B * H * (2 * Lpi * D * K2          # W_cat @ x
                     + 2 * Lpi * Gp * K2       # selector multiply-accumulate
                     + 2 * Lpi * Gp * Lpj)     # expansion matmul
    bytes_accessed = 4 * (B * H * D * Lpi      # x
                          + H * K2 * D         # W_cat
                          + K2 * Gp * Lpi      # sel_cat
                          + Gp * Lpj           # e_cat
                          + B * H * Lpi * Lpj)  # output

    out_pad = pl.pallas_call(
        rpe_cross_kernel,
        out_shape=jax.ShapeDtypeStruct((B, H, Lpi, Lpj), jnp.float32),
        grid_spec=grid_spec,
        compiler_params=pltpu.CompilerParams(
            dimension_semantics=("parallel", "parallel"),
            vmem_limit_bytes=vmem_limit_bytes),
        cost_estimate=pl.CostEstimate(
            flops=flops, transcendentals=0, bytes_accessed=bytes_accessed),
    )(xT, wT_cat, sel_cat, e_cat)

    return out_pad[:, :, :L, :L]


# ----------------------------------------------------------------------------
# Test / reference check
# ----------------------------------------------------------------------------
def _run_case(B, H, D, height, width, alpha, beta, gamma, seed):
    L = height * width
    sel_np, e_np, nb, Lpi, Lpj = build_cross_tables(height, width, alpha, beta, gamma)
    rp_rows, rp_cols, nb_full = get_cross_bucket_ids(height, width, alpha, beta, gamma)
    assert nb == nb_full

    key = jax.random.PRNGKey(seed)
    kx, kr, kc = jax.random.split(key, 3)
    x = jax.random.normal(kx, (B, H, L, D), dtype=jnp.float32)
    # lookup_table_weight shapes: (num_heads, head_dim, num_buckets); the module
    # zero-inits them — use deterministic random values for a meaningful test.
    w_rows = jax.random.normal(kr, (H, D, nb), dtype=jnp.float32) * 0.02
    w_cols = jax.random.normal(kc, (H, D, nb), dtype=jnp.float32) * 0.02

    out = rpe2d_cross_forward(x, w_rows, w_cols,
                              jnp.asarray(sel_np), jnp.asarray(e_np))
    out = jax.block_until_ready(out)

    # Plain-JAX / numpy reference of the PyTorch forward (contextual + transposed).
    table_r = np.asarray(jnp.einsum("bhld,hdn->bhln", x, w_rows))
    table_c = np.asarray(jnp.einsum("bhld,hdn->bhln", x, w_cols))
    ii = np.arange(L)[:, None]
    ref = table_r[:, :, ii, rp_rows] + table_c[:, :, ii, rp_cols]

    assert out.shape == (B, H, L, L)
    np.testing.assert_allclose(np.asarray(out), ref, atol=2e-5, rtol=2e-5)


if __name__ == "__main__":
    # Small deterministic configs (contextual mode, transposed=True, no class token).
    _run_case(B=2, H=4, D=8, height=4, width=4, alpha=1.0, beta=2.0, gamma=8.0, seed=0)
    # Non-square grid, L > 128, L not a lane multiple -> exercises i/j padding paths.
    _run_case(B=2, H=2, D=16, height=13, width=10, alpha=1.0, beta=2.0, gamma=8.0, seed=1)
    print("KERNEL_OK")
</pallas_src>

<mosaic_0001>
module attributes {stable_mosaic.version = 11 : i64} {
  func.func @rpe_cross_kernel(%arg0: i32, %arg1: i32, %arg2: memref<2x1x8x16xf32, #tpu.memory_space<vmem>>, %arg3: memref<1x10x8xf32, #tpu.memory_space<vmem>>, %arg4: memref<10x8x16xf32, #tpu.memory_space<vmem>>, %arg5: memref<8x128xf32, #tpu.memory_space<vmem>>, %arg6: memref<2x1x16x128xf32, #tpu.memory_space<vmem>>) attributes {dimension_semantics = [#tpu.dimension_semantics<parallel>, #tpu.dimension_semantics<parallel>], iteration_bounds = array<i64: 4, 1>, scalar_prefetch = 0 : i64, scratch_operands = 0 : i64, tpu.core_type = #tpu.core_type<tc>, window_params = [{transform_indices = @transform_0, window_bounds = array<i64: 2, 1, 8, 16>}, {transform_indices = @transform_1, window_bounds = array<i64: 1, 10, 8>}, {pipeline_mode = #tpu.pipeline_mode<synchronous>, transform_indices = @transform_2, window_bounds = array<i64: 10, 8, 16>}, {pipeline_mode = #tpu.pipeline_mode<synchronous>, transform_indices = @transform_3, window_bounds = array<i64: 8, 128>}, {transform_indices = @transform_4, window_bounds = array<i64: 2, 1, 16, 128>}]} {
    %c0 = arith.constant 0 : index
    %c0_0 = arith.constant 0 : index
    %c0_1 = arith.constant 0 : index
    %0 = vector.load %arg3[%c0, %c0_0, %c0_1] : memref<1x10x8xf32, #tpu.memory_space<vmem>>, vector<1x10x8xf32>
    %1 = vector.shape_cast %0 : vector<1x10x8xf32> to vector<10x8xf32>
    %c0_2 = arith.constant 0 : index
    %c0_3 = arith.constant 0 : index
    %2 = vector.load %arg5[%c0_2, %c0_3] : memref<8x128xf32, #tpu.memory_space<vmem>>, vector<8x128xf32>
    %c0_4 = arith.constant 0 : index
    %c0_5 = arith.constant 0 : index
    %c0_6 = arith.constant 0 : index
    %c0_7 = arith.constant 0 : index
    %3 = vector.load %arg2[%c0_4, %c0_5, %c0_6, %c0_7] : memref<2x1x8x16xf32, #tpu.memory_space<vmem>>, vector<1x1x8x16xf32>
    %4 = vector.shape_cast %3 : vector<1x1x8x16xf32> to vector<8x16xf32>
    %cst = arith.constant dense<0.000000e+00> : vector<10x16xf32>
    %5 = tpu.matmul %1, %4, %cst {dimension_numbers = #tpu.dot_dimension_numbers<[1], [0], [0], [1], [0, 0, 1, 1], [], []>} : vector<10x8xf32>, vector<8x16xf32>, vector<10x16xf32> -> vector<10x16xf32>
    %c0_8 = arith.constant 0 : index
    %c0_9 = arith.constant 0 : index
    %c0_10 = arith.constant 0 : index
    %6 = vector.load %arg4[%c0_8, %c0_9, %c0_10] : memref<10x8x16xf32, #tpu.memory_space<vmem>>, vector<1x8x16xf32>
    %7 = vector.shape_cast %6 : vector<1x8x16xf32> to vector<8x16xf32>
    %8 = vector.extract_strided_slice %5 {offsets = [0, 0], sizes = [1, 16], strides = [1, 1]} : vector<10x16xf32> to vector<1x16xf32>
    %9 = vector.broadcast %8 : vector<1x16xf32> to vector<8x16xf32>
    %10 = arith.mulf %7, %9 : vector<8x16xf32>
    %c1 = arith.constant 1 : index
    %c0_11 = arith.constant 0 : index
    %c0_12 = arith.constant 0 : index
    %11 = vector.load %arg4[%c1, %c0_11, %c0_12] : memref<10x8x16xf32, #tpu.memory_space<vmem>>, vector<1x8x16xf32>
    %12 = vector.shape_cast %11 : vector<1x8x16xf32> to vector<8x16xf32>
    %13 = vector.extract_strided_slice %5 {offsets = [1, 0], sizes = [1, 16], strides = [1, 1]} : vector<10x16xf32> to vector<1x16xf32>
    %14 = vector.broadcast %13 : vector<1x16xf32> to vector<8x16xf32>
    %15 = arith.mulf %12, %14 : vector<8x16xf32>
    %16 = arith.addf %10, %15 : vector<8x16xf32>
    %c2 = arith.constant 2 : index
    %c0_13 = arith.constant 0 : index
    %c0_14 = arith.constant 0 : index
    %17 = vector.load %arg4[%c2, %c0_13, %c0_14] : memref<10x8x16xf32, #tpu.memory_space<vmem>>, vector<1x8x16xf32>
    %18 = vector.shape_cast %17 : vector<1x8x16xf32> to vector<8x16xf32>
    %19 = vector.extract_strided_slice %5 {offsets = [2, 0], sizes = [1, 16], strides = [1, 1]} : vector<10x16xf32> to vector<1x16xf32>
    %20 = vector.broadcast %19 : vector<1x16xf32> to vector<8x16xf32>
    %21 = arith.mulf %18, %20 : vector<8x16xf32>
    %22 = arith.addf %16, %21 : vector<8x16xf32>
    %c3 = arith.constant 3 : index
    %c0_15 = arith.constant 0 : index
    %c0_16 = arith.constant 0 : index
    %23 = vector.load %arg4[%c3, %c0_15, %c0_16] : memref<10x8x16xf32, #tpu.memory_space<vmem>>, vector<1x8x16xf32>
    %24 = vector.shape_cast %23 : vector<1x8x16xf32> to vector<8x16xf32>
    %25 = vector.extract_strided_slice %5 {offsets = [3, 0], sizes = [1, 16], strides = [1, 1]} : vector<10x16xf32> to vector<1x16xf32>
    %26 = vector.broadcast %25 : vector<1x16xf32> to vector<8x16xf32>
    %27 = arith.mulf %24, %26 : vector<8x16xf32>
    %28 = arith.addf %22, %27 : vector<8x16xf32>
    %c4 = arith.constant 4 : index
    %c0_17 = arith.constant 0 : index
    %c0_18 = arith.constant 0 : index
    %29 = vector.load %arg4[%c4, %c0_17, %c0_18] : memref<10x8x16xf32, #tpu.memory_space<vmem>>, vector<1x8x16xf32>
    %30 = vector.shape_cast %29 : vector<1x8x16xf32> to vector<8x16xf32>
    %31 = vector.extract_strided_slice %5 {offsets = [4, 0], sizes = [1, 16], strides = [1, 1]} : vector<10x16xf32> to vector<1x16xf32>
    %32 = vector.broadcast %31 : vector<1x16xf32> to vector<8x16xf32>
    %33 = arith.mulf %30, %32 : vector<8x16xf32>
    %34 = arith.addf %28, %33 : vector<8x16xf32>
    %c5 = arith.constant 5 : index
    %c0_19 = arith.constant 0 : index
    %c0_20 = arith.constant 0 : index
    %35 = vector.load %arg4[%c5, %c0_19, %c0_20] : memref<10x8x16xf32, #tpu.memory_space<vmem>>, vector<1x8x16xf32>
    %36 = vector.shape_cast %35 : vector<1x8x16xf32> to vector<8x16xf32>
    %37 = vector.extract_strided_slice %5 {offsets = [5, 0], sizes = [1, 16], strides = [1, 1]} : vector<10x16xf32> to vector<1x16xf32>
    %38 = vector.broadcast %37 : vector<1x16xf32> to vector<8x16xf32>
    %39 = arith.mulf %36, %38 : vector<8x16xf32>
    %40 = arith.addf %34, %39 : vector<8x16xf32>
    %c6 = arith.constant 6 : index
    %c0_21 = arith.constant 0 : index
    %c0_22 = arith.constant 0 : index
    %41 = vector.load %arg4[%c6, %c0_21, %c0_22] : memref<10x8x16xf32, #tpu.memory_space<vmem>>, vector<1x8x16xf32>
    %42 = vector.shape_cast %41 : vector<1x8x16xf32> to vector<8x16xf32>
    %43 = vector.extract_strided_slice %5 {offsets = [6, 0], sizes = [1, 16], strides = [1, 1]} : vector<10x16xf32> to vector<1x16xf32>
    %44 = vector.broadcast %43 : vector<1x16xf32> to vector<8x16xf32>
    %45 = arith.mulf %42, %44 : vector<8x16xf32>
    %46 = arith.addf %40, %45 : vector<8x16xf32>
    %c7 = arith.constant 7 : index
    %c0_23 = arith.constant 0 : index
    %c0_24 = arith.constant 0 : index
    %47 = vector.load %arg4[%c7, %c0_23, %c0_24] : memref<10x8x16xf32, #tpu.memory_space<vmem>>, vector<1x8x16xf32>
    %48 = vector.shape_cast %47 : vector<1x8x16xf32> to vector<8x16xf32>
    %49 = vector.extract_strided_slice %5 {offsets = [7, 0], sizes = [1, 16], strides = [1, 1]} : vector<10x16xf32> to vector<1x16xf32>
    %50 = vector.broadcast %49 : vector<1x16xf32> to vector<8x16xf32>
    %51 = arith.mulf %48, %50 : vector<8x16xf32>
    %52 = arith.addf %46, %51 : vector<8x16xf32>
    %c8 = arith.constant 8 : index
    %c0_25 = arith.constant 0 : index
    %c0_26 = arith.constant 0 : index
    %53 = vector.load %arg4[%c8, %c0_25, %c0_26] : memref<10x8x16xf32, #tpu.memory_space<vmem>>, vector<1x8x16xf32>
    %54 = vector.shape_cast %53 : vector<1x8x16xf32> to vector<8x16xf32>
    %55 = vector.extract_strided_slice %5 {offsets = [8, 0], sizes = [1, 16], strides = [1, 1]} : vector<10x16xf32> to vector<1x16xf32>
    %56 = vector.broadcast %55 : vector<1x16xf32> to vector<8x16xf32>
    %57 = arith.mulf %54, %56 : vector<8x16xf32>
    %58 = arith.addf %52, %57 : vector<8x16xf32>
    %c9 = arith.constant 9 : index
    %c0_27 = arith.constant 0 : index
    %c0_28 = arith.constant 0 : index
    %59 = vector.load %arg4[%c9, %c0_27, %c0_28] : memref<10x8x16xf32, #tpu.memory_space<vmem>>, vector<1x8x16xf32>
    %60 = vector.shape_cast %59 : vector<1x8x16xf32> to vector<8x16xf32>
    %61 = vector.extract_strided_slice %5 {offsets = [9, 0], sizes = [1, 16], strides = [1, 1]} : vector<10x16xf32> to vector<1x16xf32>
    %62 = vector.broadcast %61 : vector<1x16xf32> to vector<8x16xf32>
    %63 = arith.mulf %60, %62 : vector<8x16xf32>
    %64 = arith.addf %58, %63 : vector<8x16xf32>
    %cst_29 = arith.constant dense<0.000000e+00> : vector<16x128xf32>
    %65 = tpu.matmul %64, %2, %cst_29 {dimension_numbers = #tpu.dot_dimension_numbers<[0], [0], [1], [1], [0, 1, 1, 1], [], []>} : vector<8x16xf32>, vector<8x128xf32>, vector<16x128xf32> -> vector<16x128xf32>
    %c0_30 = arith.constant 0 : index
    %c0_31 = arith.constant 0 : index
    %c0_32 = arith.constant 0 : index
    %c0_33 = arith.constant 0 : index
    %66 = vector.load %arg6[%c0_30, %c0_31, %c0_32, %c0_33] : memref<2x1x16x128xf32, #tpu.memory_space<vmem>>, vector<1x1x16x128xf32>
    %67 = vector.shape_cast %66 : vector<1x1x16x128xf32> to vector<16x128xf32>
    %68 = vector.shape_cast %65 : vector<16x128xf32> to vector<1x1x16x128xf32>
    tpu.vector_store %arg6[%c0_30, %c0_31, %c0_32, %c0_33], %68 {strides = array<i32>} : memref<2x1x16x128xf32, #tpu.memory_space<vmem>>, vector<1x1x16x128xf32>,
    %c1_34 = arith.constant 1 : index
    %c0_35 = arith.constant 0 : index
    %c0_36 = arith.constant 0 : index
    %c0_37 = arith.constant 0 : index
    %69 = vector.load %arg2[%c1_34, %c0_35, %c0_36, %c0_37] : memref<2x1x8x16xf32, #tpu.memory_space<vmem>>, vector<1x1x8x16xf32>
    %70 = vector.shape_cast %69 : vector<1x1x8x16xf32> to vector<8x16xf32>
    %cst_38 = arith.constant dense<0.000000e+00> : vector<10x16xf32>
    %71 = tpu.matmul %1, %70, %cst_38 {dimension_numbers = #tpu.dot_dimension_numbers<[1], [0], [0], [1], [0, 0, 1, 1], [], []>} : vector<10x8xf32>, vector<8x16xf32>, vector<10x16xf32> -> vector<10x16xf32>
    %c0_39 = arith.constant 0 : index
    %c0_40 = arith.constant 0 : index
    %c0_41 = arith.constant 0 : index
    %72 = vector.load %arg4[%c0_39, %c0_40, %c0_41] : memref<10x8x16xf32, #tpu.memory_space<vmem>>, vector<1x8x16xf32>
    %73 = vector.shape_cast %72 : vector<1x8x16xf32> to vector<8x16xf32>
    %74 = vector.extract_strided_slice %71 {offsets = [0, 0], sizes = [1, 16], strides = [1, 1]} : vector<10x16xf32> to vector<1x16xf32>
    %75 = vector.broadcast %74 : vector<1x16xf32> to vector<8x16xf32>
    %76 = arith.mulf %73, %75 : vector<8x16xf32>
    %c1_42 = arith.constant 1 : index
    %c0_43 = arith.constant 0 : index
    %c0_44 = arith.constant 0 : index
    %77 = vector.load %arg4[%c1_42, %c0_43, %c0_44] : memref<10x8x16xf32, #tpu.memory_space<vmem>>, vector<1x8x16xf32>
    %78 = vector.shape_cast %77 : vector<1x8x16xf32> to vector<8x16xf32>
    %79 = vector.extract_strided_slice %71 {offsets = [1, 0], sizes = [1, 16], strides = [1, 1]} : vector<10x16xf32> to vector<1x16xf32>
    %80 = vector.broadcast %79 : vector<1x16xf32> to vector<8x16xf32>
    %81 = arith.mulf %78, %80 : vector<8x16xf32>
    %82 = arith.addf %76, %81 : vector<8x16xf32>
    %c2_45 = arith.constant 2 : index
    %c0_46 = arith.constant 0 : index
    %c0_47 = arith.constant 0 : index
    %83 = vector.load %arg4[%c2_45, %c0_46, %c0_47] : memref<10x8x16xf32, #tpu.memory_space<vmem>>, vector<1x8x16xf32>
    %84 = vector.shape_cast %83 : vector<1x8x16xf32> to vector<8x16xf32>
    %85 = vector.extract_strided_slice %71 {offsets = [2, 0], sizes = [1, 16], strides = [1, 1]} : vector<10x16xf32> to vector<1x16xf32>
    %86 = vector.broadcast %85 : vector<1x16xf32> to vector<8x16xf32>
    %87 = arith.mulf %84, %86 : vector<8x16xf32>
    %88 = arith.addf %82, %87 : vector<8x16xf32>
    %c3_48 = arith.constant 3 : index
    %c0_49 = arith.constant 0 : index
    %c0_50 = arith.constant 0 : index
    %89 = vector.load %arg4[%c3_48, %c0_49, %c0_50] : memref<10x8x16xf32, #tpu.memory_space<vmem>>, vector<1x8x16xf32>
    %90 = vector.shape_cast %89 : vector<1x8x16xf32> to vector<8x16xf32>
    %91 = vector.extract_strided_slice %71 {offsets = [3, 0], sizes = [1, 16], strides = [1, 1]} : vector<10x16xf32> to vector<1x16xf32>
    %92 = vector.broadcast %91 : vector<1x16xf32> to vector<8x16xf32>
    %93 = arith.mulf %90, %92 : vector<8x16xf32>
    %94 = arith.addf %88, %93 : vector<8x16xf32>
    %c4_51 = arith.constant 4 : index
    %c0_52 = arith.constant 0 : index
    %c0_53 = arith.constant 0 : index
    %95 = vector.load %arg4[%c4_51, %c0_52, %c0_53] : memref<10x8x16xf32, #tpu.memory_space<vmem>>, vector<1x8x16xf32>
    %96 = vector.shape_cast %95 : vector<1x8x16xf32> to vector<8x16xf32>
    %97 = vector.extract_strided_slice %71 {offsets = [4, 0], sizes = [1, 16], strides = [1, 1]} : vector<10x16xf32> to vector<1x16xf32>
    %98 = vector.broadcast %97 : vector<1x16xf32> to vector<8x16xf32>
    %99 = arith.mulf %96, %98 : vector<8x16xf32>
    %100 = arith.addf %94, %99 : vector<8x16xf32>
    %c5_54 = arith.constant 5 : index
    %c0_55 = arith.constant 0 : index
    %c0_56 = arith.constant 0 : index
    %101 = vector.load %arg4[%c5_54, %c0_55, %c0_56] : memref<10x8x16xf32, #tpu.memory_space<vmem>>, vector<1x8x16xf32>
    %102 = vector.shape_cast %101 : vector<1x8x16xf32> to vector<8x16xf32>
    %103 = vector.extract_strided_slice %71 {offsets = [5, 0], sizes = [1, 16], strides = [1, 1]} : vector<10x16xf32> to vector<1x16xf32>
    %104 = vector.broadcast %103 : vector<1x16xf32> to vector<8x16xf32>
    %105 = arith.mulf %102, %104 : vector<8x16xf32>
    %106 = arith.addf %100, %105 : vector<8x16xf32>
    %c6_57 = arith.constant 6 : index
    %c0_58 = arith.constant 0 : index
    %c0_59 = arith.constant 0 : index
    %107 = vector.load %arg4[%c6_57, %c0_58, %c0_59] : memref<10x8x16xf32, #tpu.memory_space<vmem>>, vector<1x8x16xf32>
    %108 = vector.shape_cast %107 : vector<1x8x16xf32> to vector<8x16xf32>
    %109 = vector.extract_strided_slice %71 {offsets = [6, 0], sizes = [1, 16], strides = [1, 1]} : vector<10x16xf32> to vector<1x16xf32>
    %110 = vector.broadcast %109 : vector<1x16xf32> to vector<8x16xf32>
    %111 = arith.mulf %108, %110 : vector<8x16xf32>
    %112 = arith.addf %106, %111 : vector<8x16xf32>
    %c7_60 = arith.constant 7 : index
    %c0_61 = arith.constant 0 : index
    %c0_62 = arith.constant 0 : index
    %113 = vector.load %arg4[%c7_60, %c0_61, %c0_62] : memref<10x8x16xf32, #tpu.memory_space<vmem>>, vector<1x8x16xf32>
    %114 = vector.shape_cast %113 : vector<1x8x16xf32> to vector<8x16xf32>
    %115 = vector.extract_strided_slice %71 {offsets = [7, 0], sizes = [1, 16], strides = [1, 1]} : vector<10x16xf32> to vector<1x16xf32>
    %116 = vector.broadcast %115 : vector<1x16xf32> to vector<8x16xf32>
    %117 = arith.mulf %114, %116 : vector<8x16xf32>
    %118 = arith.addf %112, %117 : vector<8x16xf32>
    %c8_63 = arith.constant 8 : index
    %c0_64 = arith.constant 0 : index
    %c0_65 = arith.constant 0 : index
    %119 = vector.load %arg4[%c8_63, %c0_64, %c0_65] : memref<10x8x16xf32, #tpu.memory_space<vmem>>, vector<1x8x16xf32>
    %120 = vector.shape_cast %119 : vector<1x8x16xf32> to vector<8x16xf32>
    %121 = vector.extract_strided_slice %71 {offsets = [8, 0], sizes = [1, 16], strides = [1, 1]} : vector<10x16xf32> to vector<1x16xf32>
    %122 = vector.broadcast %121 : vector<1x16xf32> to vector<8x16xf32>
    %123 = arith.mulf %120, %122 : vector<8x16xf32>
    %124 = arith.addf %118, %123 : vector<8x16xf32>
    %c9_66 = arith.constant 9 : index
    %c0_67 = arith.constant 0 : index
    %c0_68 = arith.constant 0 : index
    %125 = vector.load %arg4[%c9_66, %c0_67, %c0_68] : memref<10x8x16xf32, #tpu.memory_space<vmem>>, vector<1x8x16xf32>
    %126 = vector.shape_cast %125 : vector<1x8x16xf32> to vector<8x16xf32>
    %127 = vector.extract_strided_slice %71 {offsets = [9, 0], sizes = [1, 16], strides = [1, 1]} : vector<10x16xf32> to vector<1x16xf32>
    %128 = vector.broadcast %127 : vector<1x16xf32> to vector<8x16xf32>
    %129 = arith.mulf %126, %128 : vector<8x16xf32>
    %130 = arith.addf %124, %129 : vector<8x16xf32>
    %cst_69 = arith.constant dense<0.000000e+00> : vector<16x128xf32>
    %131 = tpu.matmul %130, %2, %cst_69 {dimension_numbers = #tpu.dot_dimension_numbers<[0], [0], [1], [1], [0, 1, 1, 1], [], []>} : vector<8x16xf32>, vector<8x128xf32>, vector<16x128xf32> -> vector<16x128xf32>
    %c1_70 = arith.constant 1 : index
    %c0_71 = arith.constant 0 : index
    %c0_72 = arith.constant 0 : index
    %c0_73 = arith.constant 0 : index
    %132 = vector.load %arg6[%c1_70, %c0_71, %c0_72, %c0_73] : memref<2x1x16x128xf32, #tpu.memory_space<vmem>>, vector<1x1x16x128xf32>
    %133 = vector.shape_cast %132 : vector<1x1x16x128xf32> to vector<16x128xf32>
    %134 = vector.shape_cast %131 : vector<16x128xf32> to vector<1x1x16x128xf32>
    tpu.vector_store %arg6[%c1_70, %c0_71, %c0_72, %c0_73], %134 {strides = array<i32>} : memref<2x1x16x128xf32, #tpu.memory_space<vmem>>, vector<1x1x16x128xf32>,
    return
  }
  func.func @transform_0(%arg0: i32, %arg1: i32) -> (i32, i32, i32, i32) {
    %c0_i32 = arith.constant 0 : i32
    %c0_i32_0 = arith.constant 0 : i32
    %c0_i32_1 = arith.constant 0 : i32
    return %arg1, %arg0, %c0_i32, %c0_i32_0 : i32, i32, i32, i32
  }
  func.func @transform_1(%arg0: i32, %arg1: i32) -> (i32, i32, i32) {
    %c0_i32 = arith.constant 0 : i32
    %c0_i32_0 = arith.constant 0 : i32
    %c0_i32_1 = arith.constant 0 : i32
    return %arg0, %c0_i32, %c0_i32_0 : i32, i32, i32
  }
  func.func @transform_2(%arg0: i32, %arg1: i32) -> (i32, i32, i32) {
    %c0_i32 = arith.constant 0 : i32
    %c0_i32_0 = arith.constant 0 : i32
    %c0_i32_1 = arith.constant 0 : i32
    %c0_i32_2 = arith.constant 0 : i32
    return %c0_i32, %c0_i32_0, %c0_i32_1 : i32, i32, i32
  }
  func.func @transform_3(%arg0: i32, %arg1: i32) -> (i32, i32) {
    %c0_i32 = arith.constant 0 : i32
    %c0_i32_0 = arith.constant 0 : i32
    %c0_i32_1 = arith.constant 0 : i32
    return %c0_i32, %c0_i32_0 : i32, i32
  }
  func.func @transform_4(%arg0: i32, %arg1: i32) -> (i32, i32, i32, i32) {
    %c0_i32 = arith.constant 0 : i32
    %c0_i32_0 = arith.constant 0 : i32
    %c0_i32_1 = arith.constant 0 : i32
    return %arg1, %arg0, %c0_i32, %c0_i32_0 : i32, i32, i32, i32
  }
}

</mosaic_0001>

<bundles_post_ra>
// kernel: tpu_custom_call.1
= control target key start
LH: loop header
LB: loop body
LE: loop exit
PB: predicated region body
PF: predicated region fallthrough
CT: control target
= control target key end

     0   :  { %9 = vsyncpa [#allocation3], 0  ;;  %s1446_s0 = inlined_call_operand.hbm [shape: f32[2,4,8,16], index: 0, kind: input, shape index: {}]   ;;  %s1447_s1 = inlined_call_operand.vmem [shape: f32[4,10,8], index: 1, kind: input, shape index: {}]   ;;  %s1448_s2 = inlined_call_operand.vmem [shape: f32[10,8,16], index: 2, kind: input, shape index: {}]   ;;  %s1449_s3 = inlined_call_operand.vmem [shape: f32[8,128], index: 3, kind: input, shape index: {}]   ;;  %s1450_s4 = inlined_call_operand.hbm [shape: f32[2,4,16,128], index: 4, kind: output, shape index: {}]  }
   0x1   :  { %11 = vsyncpa [#allocation3 + $0x1], 0 }
   0x2   :  { %12 = vsyncpa [#allocation4], 0 }
   0x3   :  { %14 = vsyncpa [#allocation4 + $0x1], 0  ;;  %s1221_s15 = smov 0   ;;  %s1223_s16 = smov 0  }
   0x4   :  { %s1225_s17 = smov 0   ;;  %s1227_s18 = smov 0  }
   0x5   :  { %s1229_s19 = smov 0   ;;  %s1231_s20 = smov 0  }
   0x6 LB: > { %s941_s21 = sadd.s32 4294967295, %s1183_s20   ;;  %s942_s22 = sadd.s32 4294967294, %s1183_s20   ;;  %s1183_s20 = sphi %s1231_s20, %s20_s20   ;;  %s1179_s19 = sphi %s1229_s19, %s1463_s19   ;;  %s1175_s18 = sphi %s1227_s18, %s1462_s18   ;;  %s1171_s17 = sphi %s1225_s17, %s1461_s17   ;;  %s1167_s16 = sphi %s1223_s16, %s1460_s16   ;;  %s1163_s15 = sphi %s1221_s15, %s1459_s15  }
   0x7   : > { %s32_s23 = sadd.s32 1, %s1179_s19  ;;  %s41_s24 = sadd.s32 1, %s1171_s17 }
   0x8   : > { %p34_p0 = scmp.ge.s32.totalorder %s32_s23, 4  ;;  %p48_p1 = scmp.ne.s32.totalorder %s1171_s17, %s1167_s16 }
   0x9   : > { %p49_p2 = scmp.eq.s32.totalorder %s1183_s20, 0  ;;  %p54_p3 = scmp.ne.s32.totalorder %s1167_s16, %s1163_s15 }
   0xa   : > { %s1465_s23 = smov (%p34_p0, %s32_s23), 0  ;;  %p55_p5 = scmp.eq.s32.totalorder %s941_s21, 0 }
   0xb   : > { %p1262_p4 = por %p49_p2, %p48_p1  ;;  %s37_s26 = ssub.s32 %s1179_s19, %s1465_s23 }
   0xc   : > { %p148_p6 = scmp.eq.s32.totalorder %s941_s21, 3  ;;  %p39_p7 = scmp.eq.s32.totalorder %s37_s26, 0 }
   0xd   : > { %p1268_p8 = por %p55_p5, %p54_p3  ;;  %p154_p10 = scmp.eq.s32.totalorder %s942_s22, 3 }
   0xe   : > { %p1272_p9 = por %p148_p6, %p48_p1  ;;  %p1038_p12 = scmp.lt.s32.totalorder %s1183_s20, 4 }
   0xf   : > { %s1277_s29 = scalar_select %p39_p7, %s1171_s17, %s41_s24  }
  0x10   : > { %s1454_s28 = scalar_select %p1272_p9, 1, 0 }
  0x11   : > { %p1279_p11 = por %p154_p10, %p54_p3  ;;  %s180_s5 = sand.u32 1, %s1171_s17  }
  0x12   : > { %s945_s6 = sshll.u32 %s180_s5, 4  ;;  %s946_s7 = sshll.u32 %s1179_s19, 7 }
  0x13   : > { %s1455_s30 = scalar_select %p1279_p11, 1, 0 }
  0x14   : > { %s1289_s10 = scalar_lea.hbm %s1446_s0, %s946_s7  ;;  %s184_s11 = scalar_lea.vmem [#allocation2], %s945_s6 }
  0x15   : > { %s193_s12 = sshll.u32 %s184_s11, 4  ;;  %p1295_p13 = pnand %p1038_p12, %p1262_p4  ;;  %s1291_s12 = int_to_ptr.vmem [resolvable:$true] %s193_s12 }
  0x16   : > { %s1299_s14 = scalar_lea.sflag [#allocation3], %s180_s5  ;;  %s1099_s21 = scalar_lea.hbm %s1289_s10, 256 }
  0x17   : > { %p1100_p0 = scmp.ne.s32.totalorder %s1289_s10, %s1099_s21  ;;  %p1101_p1 = pneg %p1295_p13 }
  0x18   : > { %s1104_s25 = scalar_lea.hbm %s1446_s0, 1024  ;;  %p1105_p4 = scmp.lt.u32.totalorder %s1289_s10, %s1446_s0 }
  0x19   : > { %p1102_p2 = pnand %p1101_p1, %p1100_p0  ;;  %p1106_p5 = scmp.lt.u32.totalorder %s1104_s25, %s1099_s21 }
  0x1a   : > { %p1108_p7 = scmp.lt.u32.totalorder %s1099_s21, %s1289_s10 }
  0x1b   : > { %p1103_p3 = pneg %p1102_p2  ;;  %p1107_p6 = por %p1106_p5, %p1105_p4 }
  0x1d   : > { %p1109_p10 = por %p1108_p7, %p1107_p6 }
  0x1f   : > { %p1110_p12 = pnand %p1109_p10, %p1103_p3 }
  0x21   : > { %1113 = shalt.err (!%p1110_p12)
}
  0x22   : > { %s1114_s5 = scalar_lea.vmem %s1291_s12, 256  ;;  %s1185_s7 = smov [#allocation2]  }
  0x23   : > { %p1115_p0 = scmp.ne.s32.totalorder %s1291_s12, %s1114_s5  ;;  %s1119_s8 = sshll.u32 %s1185_s7, 4  ;;  %s1120_s8 = int_to_ptr.vmem [resolvable:$false] %s1119_s8 }
  0x24   : > { %s1121_s9 = scalar_lea.vmem %s1120_s8, 512  ;;  %p1122_p9 = scmp.lt.s32.totalorder %s1291_s12, %s1120_s8 }
  0x25   : > { %p1117_p2 = pnand %p1115_p0, %p1101_p1  ;;  %p1123_p4 = scmp.lt.s32.totalorder %s1121_s9, %s1114_s5 }
  0x27   : > { %p1118_p11 = pneg %p1117_p2  ;;  %p1124_p5 = por %p1123_p4, %p1122_p9 }
  0x29   : > { %p1125_p6 = pnand %p1124_p5, %p1118_p11 }
  0x2b   : > { %1128 = shalt.err (!%p1125_p6)
}
  0x2c   : > { %s1186_s11 = smov 512   ;;  %s1187_s21 = smov 128  }
  0x2d   : > { %s1188_s22 = smov 8   ;;  %p947_p1 = scmp.ge.s32.totalorder %s1183_s20, 1 }
  0x2e   : > { %1033 = dma.hbm_to_vmem [thread:$0]  (!%p1295_p13), %s1289_s10, 256, %s1291_s12, %s1299_s14, %s1186_s11, %s1187_s21, %s1188_s22  }
  0x2f   : > { %p209_p3 = scmp.lt.s32.totalorder %s1183_s20, 5 }
  0x31   : > { %p210_p7 = pnand %p947_p1, %p209_p3 }
  0x32   : > { %s1330_s24 = sand.u32 (!%p210_p7), 1, %s1167_s16  }
  0x33   : > { %213 = sbr.rel (%p210_p7) target bundleno = 669 (0x29d), region = 36  ;;  %s948_s25 = sshll.u32 (!%p210_p7), %s1330_s24, 4 }
  0x34   : > { %s216_s26 = scalar_lea.sflag (!%p210_p7), [#allocation3], %s1330_s24  ;;  %s219_s6 = scalar_lea.vmem (!%p210_p7), [#allocation2], %s948_s25 }
  0x3a   : > { %1154 = dma.done.wait (%p1268_p8), %s216_s26, 256  }
  0x3b   : > { %1156 = vsyncadd (%p1268_p8), %s216_s26, 4294967040  ;;  %p250_p9 = scmp.lt.s32.totalorder %s1175_s18, 3  ;;  %vm260_vm0 = vcmask 64512   ;;  %v259_v0 = vld [vmem:[%s219_s6] sm:$0xff]  ;;  %v965_v3 = vld [vmem:[%s219_s6 + $0x8] sm:$0xff]  ;;  %v343_v4 = vlaneseq  ;;  %s949_s25 = sshll.u32 %s1330_s24, 5 }
  0x3c   : > { %1000 = vmatprep.subr.mxu0 %v259_v0  ;;  %v612_v12 = vld [vmem:[%s1448_s2] sm:$0xff]  ;;  %v968_v13 = vld [vmem:[%s1448_s2 + $0x8] sm:$0xff]  ;;  %v955_v21 = vld [vmem:[%s1448_s2 + $0x10] sm:$0xff]  ;;  %s248_s26 = scalar_lea.vmem [#allocation5], %s949_s25  ;;  %s798_s6 = scalar_lea.sflag [#allocation4], %s1330_s24 }
  0x3d   : > { %s251_s10 = scalar_select %p250_p9, %s1175_s18, 3  ;;  %1001 = vmatpush3.msra.mxu0 %v259_v0  ;;  %v344_v5 = vshrl.u32 %v343_v4, 7  ;;  %v956_v29 = vld [vmem:[%s1448_s2 + $0x18] sm:$0xff]  ;;  %v957_v36 = vld [vmem:[%s1448_s2 + $0x20] sm:$0xff]  ;;  %v958_v42 = vld [vmem:[%s1448_s2 + $0x28] sm:$0xff] }
  0x3e   : > { %1010 = vmatprep.subr.mxu0 %v965_v3  ;;  %v959_v49 = vld [vmem:[%s1448_s2 + $0x30] sm:$0xff]  ;;  %v960_v55 = vld [vmem:[%s1448_s2 + $0x38] sm:$0xff]  ;;  %v961_v62 = vld [vmem:[%s1448_s2 + $0x40] sm:$0xff] }
  0x3f   : > { %s986_s12 = sshll.u32 %s251_s10, 4  ;;  %v1347_v6 = vsub.s32 0, %v344_v5  ;;  %v1349_v7 = vsub.s32 1, %v344_v5  ;;  %v360_v8 = vsub.s32 2, %v344_v5  ;;  %v368_v11 = vsub.s32 3, %v344_v5 }
  0x40   : > { %s254_s5 = scalar_lea.vmem %s1447_s1, %s986_s12  ;;  %v376_v17 = vsub.s32 4, %v344_v5  ;;  %v384_v24 = vsub.s32 5, %v344_v5  ;;  %v392_v33 = vsub.s32 6, %v344_v5  ;;  %v400_v41 = vsub.s32 7, %v344_v5 }
  0x41   : > { %v256_v1 = vld [vmem:[%s254_s5] sm:$0xff]  ;;  %v257_v2 = vld [vmem:[%s254_s5 + $0x8] sm:$0x3] }
  0x42   : > { %1002 = vmatprep.mubr.msk.f32.mxu0 %vm260_vm0, %v256_v1 }
  0x43   : > { %1003 = vmatmul.mubr.msk.f32.vlgmr.msra.gmra.mrb[0].mxu0 %vm260_vm0, %v257_v2 }
  0x44   : > { %1011 = vmatpush3.msra.mxu0 %v965_v3  ;;  %1012 = vmatprep.mubr.msk.f32.mxu0 %vm260_vm0, %v256_v1 }
  0x47   : > { %1013 = vmatmul.mubr.msk.f32.vlgmr.msra.gmra.mrb[2].mxu0 %vm260_vm0, %v257_v2 }
 0x116   : > { %v1351_v9 = vpop.f32.mrb[0].mxu0 }
 0x117   : > { %v333_v10 = vpop.f32.mrb[1].mxu0  ;;  %v409_v59 = vrot.slane %v1351_v9, %v1347_v6  ;;  %v417_v2 = vrot.slane %v1351_v9, %v1349_v7 }
 0x118   : > { %v346_v14 = vrot.slane %v333_v10, %v1347_v6  ;;  %v353_v15 = vrot.slane %v333_v10, %v1349_v7  ;;  %v361_v16 = vrot.slane %v333_v10, %v360_v8  ;;  %v369_v23 = vrot.slane %v333_v10, %v368_v11 }
 0x119   : > { %v377_v32 = vrot.slane %v333_v10, %v376_v17  ;;  %v385_v40 = vrot.slane %v333_v10, %v384_v24  ;;  %v393_v48 = vrot.slane %v333_v10, %v392_v33  ;;  %v401_v54 = vrot.slane %v333_v10, %v400_v41 }
 0x11a   : > { %v1361_v18 = vpop.f32.mrb[2].mxu0  ;;  %v347_v19 = vmul.f32 %v612_v12, %v346_v14  ;;  %v354_v20 = vmul.f32 %v968_v13, %v353_v15  ;;  %v362_v31 = vmul.f32 %v955_v21, %v361_v16  ;;  %v370_v39 = vmul.f32 %v956_v29, %v369_v23 }
 0x11b   : > { %v603_v22 = vpop.f32.mrb[3].mxu0  ;;  %v378_v47 = vmul.f32 %v957_v36, %v377_v32  ;;  %v386_v53 = vmul.f32 %v958_v42, %v385_v40  ;;  %v394_v61 = vmul.f32 %v959_v49, %v393_v48  ;;  %v402_v4 = vmul.f32 %v960_v55, %v401_v54 }
 0x11c   : > { %v616_v25 = vrot.slane %v603_v22, %v1347_v6  ;;  %v622_v26 = vrot.slane %v603_v22, %v1349_v7  ;;  %v629_v27 = vrot.slane %v603_v22, %v360_v8  ;;  %v636_v28 = vrot.slane %v603_v22, %v368_v11  ;;  %v962_v8 = vld [vmem:[%s1448_s2 + $0x48] sm:$0xff] }
 0x11d   : > { %v355_v30 = vadd.f32 %v354_v20, %v347_v19  ;;  %v643_v45 = vrot.slane %v603_v22, %v376_v17  ;;  %v650_v51 = vrot.slane %v603_v22, %v384_v24  ;;  %v657_v58 = vrot.slane %v603_v22, %v392_v33  ;;  %v258_v24 = vld [vmem:[%s1449_s3] sm:$0xff] }
 0x11e   : > { %v617_v34 = vmul.f32 %v616_v25, %v612_v12  ;;  %v623_v35 = vmul.f32 %v968_v13, %v622_v26  ;;  %v630_v37 = vmul.f32 %v955_v21, %v629_v27  ;;  %v637_v44 = vmul.f32 %v956_v29, %v636_v28  ;;  %1005 = vmatprep.subr.mxu1 %v258_v24 }
 0x11f   : > { %v363_v38 = vadd.f32 %v362_v31, %v355_v30  ;;  %v644_v57 = vmul.f32 %v957_v36, %v643_v45  ;;  %v651_v0 = vmul.f32 %v958_v42, %v650_v51  ;;  %v664_v1 = vrot.slane %v603_v22, %v400_v41  ;;  %1006 = vmatpush3.msra.mxu1 %v258_v24 }
 0x120   : > { %v624_v43 = vadd.f32 %v623_v35, %v617_v34  ;;  %v671_v5 = vrot.slane %v1361_v18, %v1347_v6  ;;  %v658_v11 = vmul.f32 %v959_v49, %v657_v58  ;;  %v410_v12 = vmul.f32 %v961_v62, %v409_v59  ;;  %1015 = vmatprep.subr.mxu1 %v258_v24 }
 0x121   : > { %v371_v46 = vadd.f32 %v370_v39, %v363_v38  ;;  %v678_v14 = vrot.slane %v1361_v18, %v1349_v7  ;;  %v665_v16 = vmul.f32 %v960_v55, %v664_v1  ;;  %v418_v9 = vmul.f32 %v962_v8, %v417_v2 }
 0x122   : > { %v631_v50 = vadd.f32 %v630_v37, %v624_v43  ;;  %v672_v19 = vmul.f32 %v961_v62, %v671_v5 }
 0x123   : > { %v379_v52 = vadd.f32 %v378_v47, %v371_v46  ;;  %v679_v6 = vmul.f32 %v962_v8, %v678_v14 }
 0x124   : > { %v638_v56 = vadd.f32 %v637_v44, %v631_v50 }
 0x125   : > { %v387_v60 = vadd.f32 %v386_v53, %v379_v52 }
 0x126   : > { %v645_v63 = vadd.f32 %v644_v57, %v638_v56 }
 0x127   : > { %v395_v3 = vadd.f32 %v394_v61, %v387_v60 }
 0x128   : > { %v652_v10 = vadd.f32 %v651_v0, %v645_v63 }
 0x129   : > { %v403_v13 = vadd.f32 %v402_v4, %v395_v3 }
 0x12a   : > { %v659_v15 = vadd.f32 %v658_v11, %v652_v10 }
 0x12b   : > { %v411_v17 = vadd.f32 %v410_v12, %v403_v13 }
 0x12c   : > { %v666_v20 = vadd.f32 %v665_v16, %v659_v15 }
 0x12d   : > { %v419_v21 = vadd.f32 %v418_v9, %v411_v17 }
 0x12e   : > { %v673_v22 = vadd.f32 %v672_v19, %v666_v20 }
 0x12f   : > { %420 = vxpose.xlu0.b32.start.end [1/1] (short) (narrow) %v419_v21, 16 }
 0x130   : > { %v680_v23 = vadd.f32 %v679_v6, %v673_v22 }
 0x134   : > { %681 = vxpose.xlu0.b32.start.end [1/1] (short) (narrow) %v680_v23, 16 }
 0x1af   : > { %v436_v7 = vpop.trf.xlu0 }
 0x1b0   : > { %1007 = vmatprep.mubr.msk.f32.mxu1 %vm260_vm0, %v436_v7 }
 0x1b3   : > { %v437_v18 = vpop.trf.xlu0 }
 0x1b4   : > { %1008 = vmatmul.mubr.msk.f32.vlgmr.msra.gmra.mrb[0].mxu1 %vm260_vm0, %v437_v18 }
 0x1b5   : > { %1016 = vmatpush3.msra.mxu1 %v258_v24 }
 0x1b7   : > { %v697_v25 = vpop.trf.xlu0 }
 0x1b8   : > { %1017 = vmatprep.mubr.msk.f32.mxu1 %vm260_vm0, %v697_v25 }
 0x1bb   : > { %v698_v26 = vpop.trf.xlu0 }
 0x1bc   : > { %1018 = vmatmul.mubr.msk.f32.vlgmr.msra.gmra.mrb[2].mxu1 %vm260_vm0, %v698_v26 }
 0x287   : > { %v1009_v27 = vpop.f32.mrb[0].mxu1 }
 0x288   : > { %534 = vst [vmem:[%s248_s26 + $0x8] sm:$0xff] %v1009_v27  ;;  %v524_v28 = vpop.f32.mrb[1].mxu1 }
 0x289   : > { %533 = vst [vmem:[%s248_s26] sm:$0xff] %v524_v28 }
 0x28f   : > { %v1019_v29 = vpop.f32.mrb[2].mxu1 }
 0x290   : > { %980 = vst [vmem:[%s248_s26 + $0x18] sm:$0xff] %v1019_v29  ;;  %v785_v30 = vpop.f32.mrb[3].mxu1 }
 0x291   : > { %979 = vst [vmem:[%s248_s26 + $0x10] sm:$0xff] %v785_v30 }
 0x292   : > { %s987_s10 = sshll.u32 %s1175_s18, 8  ;;  %s830_s12 = sshll.u32 %s248_s26, 4  ;;  %s831_s12 = int_to_ptr.vmem [resolvable:$true] %s830_s12 }
 0x293   : > { %s813_s5 = scalar_lea.hbm %s1450_s4, %s987_s10  ;;  %s1189_s27 = smov 256  }
 0x294   : > { %p1457_p8 = scmp.ne.s32.totalorder %s1454_s28, 0  ;;  %s1190_s7 = smov 1024  }
 0x295   : > { %s1191_s24 = smov 2   ;;  %s1192_s8 = smov 128  }
 0x296   : > { %1022 = sst [smem:[#allocation7]] (%p1457_p8), %s1189_s27  ;;  %s1193_s18 = smov 8  }
 0x297   : > { %1023 = sst [smem:[#allocation7 + $0x1]] (%p1457_p8), %s1190_s7  ;;  %s1194_s9 = smov [#allocation6]  }
 0x298   : > { %1024 = sst [smem:[#allocation7 + $0x2]] (%p1457_p8), %s1191_s24  ;;  %s1195_s11 = smov 0  }
 0x299   : > { %1025 = sst [smem:[#allocation7 + $0x3]] (%p1457_p8), %s1192_s8 }
 0x29a   : > { %1026 = sst [smem:[#allocation7 + $0x4]] (%p1457_p8), %s1192_s8 }
 0x29b   : > { %1027 = sst [smem:[#allocation7 + $0x5]] (%p1457_p8), %s1193_s18 }
 0x29c   : > { %1028 = dma.general (%p1457_p8), %s831_s12, 512, %s813_s5, %s798_s6, %s1194_s9, [#allocation7], %s1195_s11, 0  }
 0x29d PF: > { %p1039_p11 = scmp.ge.s32.totalorder %s1183_s20, 2  ;;  %s858_s21 = sand.u32 1, %s1163_s15  }
 0x29e   : > { %p1458_p13 = scmp.ne.s32.totalorder %s1455_s30, 0  ;;  %s859_s22 = scalar_lea.sflag [#allocation4], %s858_s21 }
 0x2a0   : > { %p1035_p10 = pnand %p1039_p11, %p1458_p13 }
 0x2a2   : > { %1158 = dma.done.wait (!%p1035_p10), %s859_s22, 512  }
 0x2a3   : > { %1160 = vsyncadd (!%p1035_p10), %s859_s22, 4294966784  ;;  %s20_s20 = sadd.s32 1, %s1183_s20   ;;  %s1459_s15 = smov %s1167_s16 }
 0x2a4   : > { %p17_p12 = scmp.ge.s32.totalorder %s20_s20, 6   ;;  %s1460_s16 = smov %s1171_s17 }
 0x2a5   : > { %s1461_s17 = smov %s1277_s29  ;;  %s1462_s18 = smov %s1179_s19 }
 0x2a6   : > { %s1463_s19 = smov %s1465_s23  ;;  %19 = sbr.rel (!%p17_p12) target bundleno = 6 (0x6), region = 100 }
 0x2ad   :  { %864 = vsyncpa [#allocation3], 1 }
 0x2ae   :  { %866 = vsyncpa [#allocation3 + $0x1], 1 }
 0x2af   :  { %867 = vsyncpa [#allocation4], 1 }
 0x2b0   :  { %869 = vsyncpa [#allocation4 + $0x1], 1 }

</bundles_post_ra>
